<compile_context>
chip_gen: v5e
topology: v5e:2x2
jax: 0.10.0
libtpu: 0.0.40
codegen_flags: <defaults>
</compile_context>

<pallas_src>
import functools

import jax
import jax.numpy as jnp
from jax import lax
from jax.experimental import pallas as pl
from jax.experimental.pallas import tpu as pltpu


_MAX_TILE_M = 256   # rows of the folded (B*T) axis per grid step (ctc head)
_MAX_TILE_S = 512   # spatial positions per grid step (gtc head)


def _vmem_limit(*blocks):
    """Explicit VMEM budget: double-buffered blocks + slack, clamped so it is
    safe on v7x (64 MiB physical) while still raising the default on v5e/v6e."""
    need = 0
    for shape, dt in blocks:
        n = 1
        for d in shape:
            n *= int(d)
        need += 2 * n * jnp.dtype(dt).itemsize
    need += 1 << 20
    return int(min(max(need, 32 << 20), 64 << 20))


# ---------------------------------------------------------------------------
# Kernels
# ---------------------------------------------------------------------------

def _linear_softmax_kernel(x_ref, w_ref, b_ref, o_ref, *, apply_softmax):
    # x_ref: (tile_m, C) bf16, w_ref: (C, N) bf16, b_ref: (1, N) f32.
    logits = jnp.dot(x_ref[...], w_ref[...],
                     preferred_element_type=jnp.float32) + b_ref[...]
    if apply_softmax:
        m = jnp.max(logits, axis=-1, keepdims=True)
        e = jnp.exp(logits - m)
        logits = e / jnp.sum(e, axis=-1, keepdims=True)
    o_ref[...] = logits.astype(o_ref.dtype)


def _linear_softmax_trans_kernel(x_ref, w_ref, b_ref, o_ref, *, apply_softmax):
    # x_ref: (C, tile_s) channel-major activation.  The transpose is folded
    # into the MXU operand feed by contracting the LHS dim 0 (no relayout).
    logits = lax.dot_general(
        x_ref[...], w_ref[...],
        dimension_numbers=(((0,), (0,)), ((), ())),
        preferred_element_type=jnp.float32) + b_ref[...]
    if apply_softmax:
        m = jnp.max(logits, axis=-1, keepdims=True)
        e = jnp.exp(logits - m)
        logits = e / jnp.sum(e, axis=-1, keepdims=True)
    o_ref[...] = logits.astype(o_ref.dtype)


# ---------------------------------------------------------------------------
# Wrappers (one pallas_call per head)
# ---------------------------------------------------------------------------

def linear_head_seq_major(x, w, b, *, apply_softmax, out_dtype=jnp.float32):
    """Linear(+softmax) over a sequence-major activation.

    x: (B, T, C) -> (B, T, N).  The batch is folded into the matmul M axis so
    each grid step processes up to _MAX_TILE_M rows (MXU fill, fewer steps).
    Partial trailing M tiles (M not a multiple of the tile) are masked by
    Pallas; rows are independent so this is safe for the softmax.
    """
    B, T, C = x.shape
    N = w.shape[1]
    M = B * T
    tile_m = M if M <= _MAX_TILE_M else _MAX_TILE_M
    grid_m = pl.cdiv(M, tile_m)

    x2d = x.reshape(M, C).astype(jnp.bfloat16)      # free leading-dim collapse
    wb = w.astype(jnp.bfloat16)
    b2d = b.reshape(1, N).astype(jnp.float32)

    kernel = functools.partial(_linear_softmax_kernel,
                               apply_softmax=apply_softmax)
    out = pl.pallas_call(
        kernel,
        out_shape=jax.ShapeDtypeStruct((M, N), out_dtype),
        grid_spec=pltpu.PrefetchScalarGridSpec(
            num_scalar_prefetch=0,
            grid=(grid_m,),
            in_specs=[
                pl.BlockSpec((tile_m, C), lambda i: (i, 0)),
                pl.BlockSpec((C, N), lambda i: (0, 0)),      # grid-invariant
                pl.BlockSpec((1, N), lambda i: (0, 0)),      # grid-invariant
            ],
            out_specs=pl.BlockSpec((tile_m, N), lambda i: (i, 0)),
        ),
        compiler_params=pltpu.CompilerParams(
            dimension_semantics=("parallel",),
            vmem_limit_bytes=_vmem_limit(
                ((tile_m, C), jnp.bfloat16), ((C, N), jnp.bfloat16),
                ((1, N), jnp.float32), ((tile_m, N), out_dtype))),
    )(x2d, wb, b2d)
    return out.reshape(B, T, N)


def linear_head_channel_major(x_cs, w, b, *, apply_softmax,
                              out_dtype=jnp.float32):
    """Linear(+softmax) over a channel-major activation.

    x_cs: (B, C, S) -> (B, S, N), equivalent to Linear(x.transpose(1,2)); the
    transpose happens inside the MXU, never in HBM or VMEM.
    """
    B, C, S = x_cs.shape
    N = w.shape[1]
    tile_s = S if S <= _MAX_TILE_S else _MAX_TILE_S
    grid_s = pl.cdiv(S, tile_s)

    xb = x_cs.astype(jnp.bfloat16)
    wb = w.astype(jnp.bfloat16)
    b2d = b.reshape(1, N).astype(jnp.float32)

    kernel = functools.partial(_linear_softmax_trans_kernel,
                               apply_softmax=apply_softmax)
    out = pl.pallas_call(
        kernel,
        out_shape=jax.ShapeDtypeStruct((B, S, N), out_dtype),
        grid_spec=pltpu.PrefetchScalarGridSpec(
            num_scalar_prefetch=0,
            grid=(B, grid_s),
            in_specs=[
                pl.BlockSpec((None, C, tile_s), lambda bi, si: (bi, 0, si)),
                pl.BlockSpec((C, N), lambda bi, si: (0, 0)),   # grid-invariant
                pl.BlockSpec((1, N), lambda bi, si: (0, 0)),   # grid-invariant
            ],
            out_specs=pl.BlockSpec((None, tile_s, N),
                                   lambda bi, si: (bi, si, 0)),
        ),
        compiler_params=pltpu.CompilerParams(
            dimension_semantics=("parallel", "parallel"),
            vmem_limit_bytes=_vmem_limit(
                ((C, tile_s), jnp.bfloat16), ((C, N), jnp.bfloat16),
                ((1, N), jnp.float32), ((tile_s, N), out_dtype))),
    )(xb, wb, b2d)
    return out


# ---------------------------------------------------------------------------
# Module
# ---------------------------------------------------------------------------

class GTCDecoderTwo:
    """JAX/Pallas equivalent of the PyTorch GTCDecoderTwo with both
    sub-decoders = CTCDecoder (Linear; softmax over classes in eval mode)."""
    # TODO(synk): only the CTCDecoder sub-decoder of build_decoder() is
    # implemented; the other attention/transformer decoder variants are
    # separate modules and out of scope for this kernel.

    def __init__(self, in_channels, out_channels, infer_gtc=True, seed=0):
        self.infer_gtc = infer_gtc
        self.training = False
        gtc_out, ctc_out = out_channels
        key = jax.random.PRNGKey(seed)
        k1, k2, k3, k4 = jax.random.split(key, 4)
        # gtc_decoder (CTCDecoder): Linear(in_channels -> out_channels[0])
        self.gtc_w = jax.random.normal(k1, (in_channels, gtc_out),
                                       jnp.float32) * 0.02
        self.gtc_b = jax.random.normal(k2, (gtc_out,), jnp.float32) * 0.02
        # ctc_decoder (CTCDecoder): Linear(in_channels -> out_channels[1])
        self.ctc_w = jax.random.normal(k3, (in_channels, ctc_out),
                                       jnp.float32) * 0.02
        self.ctc_b = jax.random.normal(k4, (ctc_out,), jnp.float32) * 0.02

    def __call__(self, x, data=None):
        x_ctc, x_gtc = x
        apply_softmax = not self.training   # CTCDecoder applies softmax in eval
        ctc_pred = linear_head_seq_major(x_ctc, self.ctc_w, self.ctc_b,
                                         apply_softmax=apply_softmax)
        if self.training or self.infer_gtc:
            B, C, H, W = x_gtc.shape
            # flatten(2) is a free reshape; the transpose(1,2) of the PyTorch
            # module is folded into the kernel's matmul.
            x_gtc_cs = x_gtc.reshape(B, C, H * W)
            gtc_pred = linear_head_channel_major(
                x_gtc_cs, self.gtc_w, self.gtc_b, apply_softmax=apply_softmax)
            return {'gtc_pred': gtc_pred, 'ctc_pred': ctc_pred}
        return ctc_pred


# ---------------------------------------------------------------------------
# Self-test
# ---------------------------------------------------------------------------

def _ref_head(x_seq, w, b, apply_softmax):
    # Pure-JAX reference with the same numerics as the kernel:
    # bf16 matmul operands, f32 accumulation and f32 softmax.
    logits = jnp.dot(x_seq.astype(jnp.bfloat16), w.astype(jnp.bfloat16),
                     preferred_element_type=jnp.float32) + b.astype(jnp.float32)
    return jax.nn.softmax(logits, axis=-1) if apply_softmax else logits


if __name__ == "__main__":
    key = jax.random.PRNGKey(0)
    kx1, kx2 = jax.random.split(key)

    B = 2
    in_channels = 32
    T = 8          # ctc sequence length
    H, W = 4, 8    # gtc feature-map spatial dims (seq = H*W = 32)
    out_channels = (48, 40)   # (gtc classes, ctc classes)

    x_ctc = jax.random.normal(kx1, (B, T, in_channels), jnp.float32)
    x_gtc = jax.random.normal(kx2, (B, in_channels, H, W), jnp.float32)

    decoder = GTCDecoderTwo(in_channels, out_channels, infer_gtc=True, seed=0)
    out = decoder((x_ctc, x_gtc))
    out = jax.tree_util.tree_map(jax.block_until_ready, out)

    assert out['ctc_pred'].shape == (B, T, out_channels[1])
    assert out['gtc_pred'].shape == (B, H * W, out_channels[0])
    # Eval-mode CTCDecoder applies softmax: rows must sum to ~1.
    assert bool(jnp.allclose(jnp.sum(out['ctc_pred'], -1), 1.0, atol=1e-3))
    assert bool(jnp.allclose(jnp.sum(out['gtc_pred'], -1), 1.0, atol=1e-3))

    # Pure-JAX reference check (eval-mode semantics of GTCDecoderTwo).
    ref_ctc = _ref_head(x_ctc, decoder.ctc_w, decoder.ctc_b, True)
    x_gtc_seq = jnp.transpose(x_gtc.reshape(B, in_channels, H * W), (0, 2, 1))
    ref_gtc = _ref_head(x_gtc_seq, decoder.gtc_w, decoder.gtc_b, True)
    assert bool(jnp.allclose(out['ctc_pred'], ref_ctc, atol=2e-3))
    assert bool(jnp.allclose(out['gtc_pred'], ref_gtc, atol=2e-3))

    print("KERNEL_OK")
</pallas_src>

<mosaic_0001>
module attributes {stable_mosaic.version = 11 : i64} {
  func.func @_linear_softmax_kernel(%arg0: i32, %arg1: memref<16x32xbf16, #tpu.memory_space<vmem>>, %arg2: memref<32x40xbf16, #tpu.memory_space<vmem>>, %arg3: memref<1x40xf32, #tpu.memory_space<vmem>>, %arg4: memref<16x40xf32, #tpu.memory_space<vmem>>) attributes {dimension_semantics = [#tpu.dimension_semantics<parallel>], iteration_bounds = array<i64: 1>, scalar_prefetch = 0 : i64, scratch_operands = 0 : i64, tpu.core_type = #tpu.core_type<tc>, window_params = [{transform_indices = @transform_0, window_bounds = array<i64: 16, 32>}, {pipeline_mode = #tpu.pipeline_mode<synchronous>, transform_indices = @transform_1, window_bounds = array<i64: 32, 40>}, {pipeline_mode = #tpu.pipeline_mode<synchronous>, transform_indices = @transform_2, window_bounds = array<i64: 1, 40>}, {transform_indices = @transform_3, window_bounds = array<i64: 16, 40>}]} {
    %c0 = arith.constant 0 : index
    %c0_0 = arith.constant 0 : index
    %0 = vector.load %arg1[%c0, %c0_0] : memref<16x32xbf16, #tpu.memory_space<vmem>>, vector<16x32xbf16>
    %c0_1 = arith.constant 0 : index
    %c0_2 = arith.constant 0 : index
    %1 = vector.load %arg2[%c0_1, %c0_2] : memref<32x40xbf16, #tpu.memory_space<vmem>>, vector<32x40xbf16>
    %cst = arith.constant dense<0.000000e+00> : vector<16x40xf32>
    %2 = tpu.matmul %0, %1, %cst {dimension_numbers = #tpu.dot_dimension_numbers<[1], [0], [0], [1], [0, 0, 1, 1], [], []>} : vector<16x32xbf16>, vector<32x40xbf16>, vector<16x40xf32> -> vector<16x40xf32>
    %c0_3 = arith.constant 0 : index
    %c0_4 = arith.constant 0 : index
    %3 = vector.load %arg3[%c0_3, %c0_4] : memref<1x40xf32, #tpu.memory_space<vmem>>, vector<1x40xf32>
    %4 = vector.broadcast %3 : vector<1x40xf32> to vector<16x40xf32>
    %5 = arith.addf %2, %4 : vector<16x40xf32>
    %cst_5 = arith.constant dense<0xFF800000> : vector<16xf32>
    %6 = vector.multi_reduction <maximumf>, %5, %cst_5 [1] : vector<16x40xf32> to vector<16xf32>
    %7 = vector.shape_cast %6 : vector<16xf32> to vector<16x1xf32>
    %8 = vector.broadcast %7 : vector<16x1xf32> to vector<16x40xf32>
    %9 = arith.subf %5, %8 : vector<16x40xf32>
    %10 = math.exp %9 : vector<16x40xf32>
    %cst_6 = arith.constant dense<0.000000e+00> : vector<16xf32>
    %11 = vector.multi_reduction <add>, %10, %cst_6 [1] : vector<16x40xf32> to vector<16xf32>
    %12 = vector.shape_cast %11 : vector<16xf32> to vector<16x1xf32>
    %13 = vector.broadcast %12 : vector<16x1xf32> to vector<16x40xf32>
    %14 = arith.divf %10, %13 : vector<16x40xf32>
    %c0_7 = arith.constant 0 : index
    %c0_8 = arith.constant 0 : index
    %15 = vector.load %arg4[%c0_7, %c0_8] : memref<16x40xf32, #tpu.memory_space<vmem>>, vector<16x40xf32>
    tpu.vector_store %arg4[%c0_7, %c0_8], %14 {strides = array<i32>} : memref<16x40xf32, #tpu.memory_space<vmem>>, vector<16x40xf32>,
    return
  }
  func.func @transform_0(%arg0: i32) -> (i32, i32) {
    %c0_i32 = arith.constant 0 : i32
    %c0_i32_0 = arith.constant 0 : i32
    return %arg0, %c0_i32 : i32, i32
  }
  func.func @transform_1(%arg0: i32) -> (i32, i32) {
    %c0_i32 = arith.constant 0 : i32
    %c0_i32_0 = arith.constant 0 : i32
    %c0_i32_1 = arith.constant 0 : i32
    return %c0_i32, %c0_i32_0 : i32, i32
  }
  func.func @transform_2(%arg0: i32) -> (i32, i32) {
    %c0_i32 = arith.constant 0 : i32
    %c0_i32_0 = arith.constant 0 : i32
    %c0_i32_1 = arith.constant 0 : i32
    return %c0_i32, %c0_i32_0 : i32, i32
  }
  func.func @transform_3(%arg0: i32) -> (i32, i32) {
    %c0_i32 = arith.constant 0 : i32
    %c0_i32_0 = arith.constant 0 : i32
    return %arg0, %c0_i32 : i32, i32
  }
}

</mosaic_0001>

<bundles_post_ra>
// kernel: tpu_custom_call.1
= control target key start
LH: loop header
LB: loop body
LE: loop exit
PB: predicated region body
PF: predicated region fallthrough
CT: control target
= control target key end

     0   :  { %8 = vsyncpa [#allocation3], 0  ;;  %s319_s0 = inlined_call_operand.hbm [shape: bf16[16,32], index: 0, kind: input, shape index: {}]   ;;  %s320_s1 = inlined_call_operand.hbm [shape: bf16[32,40], index: 1, kind: input, shape index: {}]   ;;  %s321_s2 = inlined_call_operand.vmem [shape: f32[1,40], index: 2, kind: input, shape index: {}]   ;;  %s322_s3 = inlined_call_operand.hbm [shape: f32[16,40], index: 3, kind: output, shape index: {}]  }
   0x1   :  { %9 = vsyncpa [#allocation6], 0 }
   0x2   :  { %10 = vsyncpa [#allocation4], 0  ;;  %s15_s14 = sshll.u32 %s319_s0, 4  ;;  %s274_s15 = smov [#allocation2]   ;;  %s16_s14 = int_to_ptr.hbm [resolvable:$true] %s15_s14 }
   0x3   :  { %s17_s16 = sshll.u32 %s274_s15, 4  ;;  %s28_s19 = sshll.u32 %s320_s1, 4  ;;  %s18_s16 = int_to_ptr.vmem [resolvable:$true] %s17_s16  ;;  %s29_s19 = int_to_ptr.hbm [resolvable:$true] %s28_s19 }
   0x4   :  { %s275_s20 = smov 64   ;;  %s276_s21 = smov 4  }
   0x5   :  { %23 = dma.hbm_to_vmem [thread:$0]  %s16_s14, 128, %s18_s16, [#allocation3], %s275_s20, %s275_s20, %s276_s21  }
   0x6   :  { %s277_s22 = smov [#allocation5]  }
   0x7   :  { %s30_s23 = sshll.u32 %s277_s22, 4  ;;  %s31_s23 = int_to_ptr.vmem [resolvable:$true] %s30_s23 }
   0x8   :  { %36 = dma.hbm_to_vmem [thread:$0]  %s29_s19, 256, %s31_s23, [#allocation6], %s275_s20, %s275_s20, %s276_s21  }
   0x9   :  { %268 = dma.done.wait [#allocation3], 128  }
   0xa   :  { %269 = vsyncadd [#allocation3], 4294967168 }
   0xb   :  { %270 = dma.done.wait [#allocation6], 256  }
   0xc   :  { %271 = vsyncadd [#allocation6], 4294967040  ;;  %v179_v0 = vld [vmem:[#allocation5 + $0x8] sm:$0xff]  ;;  %v178_v1 = vld [vmem:[#allocation5] sm:$0xff]  ;;  %vm75_vm0 = vcmask 261120   ;;  %vm93_vm1 = vcmask 326656  }
   0xd   :  { %85 = vmatpush.bf16.msra.mxu0 %v179_v0  ;;  %v177_v2 = vld [vmem:[#allocation2] sm:$0xff]  ;;  %s150_s27 = sshll.u32 %s322_s3, 4  ;;  %s279_s28 = smov 128   ;;  %s151_s27 = int_to_ptr.hbm [resolvable:$true] %s150_s27 }
   0xe   :  { %v187_v3 = vld [vmem:[%s321_s2] ss:$0 sm:$0xff]  ;;  %s278_s2 = smov [#allocation7]   ;;  %s280_s29 = smov 8  }
   0xf   :  { %s148_s24 = sshll.u32 %s278_s2, 4  ;;  %s149_s24 = int_to_ptr.vmem [resolvable:$true] %s148_s24 }
  0x11   :  { %86 = vmatpush.bf16.msra.mxu0 %v178_v1 }
  0x14   :  { %176 = vmatmul.msk.bf16.vlgmr.msra.gmra.mxu0 %vm75_vm0, %v177_v2 }
  0x91   :  { %v88_v4 = vpop.f32.mrf.mxu0 }
  0x92   :  { %v89_v5 = vadd.f32 %v187_v3, %v88_v4 }
  0x94   :  { %v94_v6 = vsel %vm93_vm1, %v89_v5, -inf }
  0x95   :  { %95 = vmax.xlane.f32.xlu0 %v94_v6 }
  0x99   :  { %v90_v7 = vpop.f32.mrf.mxu0 }
  0x9a   :  { %v91_v8 = vadd.f32 %v187_v3, %v90_v7 }
  0x9c   :  { %v97_v9 = vsel %vm93_vm1, %v91_v8, -inf }
  0x9d   :  { %98 = vmax.xlane.f32.xlu0 %v97_v9 }
 0x108   :  { %v96_v10 = vpop.xlane.xlu0 %95 }
 0x109   :  { %v100_v11 = vsub.f32 %v89_v5, %v96_v10 }
 0x10b   :  { %v102_v12 = vmul.f32 1.442695, %v100_v11 }
 0x10d   :  { %188 = vpow2.f32 %v102_v12 }
 0x110   :  { %v99_v13 = vpop.xlane.xlu0 %98 }
 0x111   :  { %v101_v14 = vsub.f32 %v91_v8, %v99_v13 }
 0x113   :  { %v189_v15 = vpop.eup %188  ;;  %v104_v16 = vmul.f32 1.442695, %v101_v14 }
 0x114   :  { %v106_v17 = vsel %vm93_vm1, %v189_v15, 0.0 }
 0x115   :  { %190 = vpow2.f32 %v104_v16  ;;  %107 = vadd.xlane.f32.xlu1 %v106_v17 }
 0x11b   :  { %v191_v18 = vpop.eup %190 }
 0x11c   :  { %v109_v19 = vsel %vm93_vm1, %v191_v18, 0.0 }
 0x11d   :  { %110 = vadd.xlane.f32.xlu1 %v109_v19 }
 0x188   :  { %v108_v20 = vpop.xlane.xlu1 %107 }
 0x189   :  { %192 = vrcp.f32 %v108_v20  ;;  %v123_v25 = vand.u32 2147483648, %v108_v20  ;;  %v121_v27 = vand.u32 2147483647, %v108_v20  ;;  %vm117_vm3 = vweird.f32 %v108_v20 }
 0x18b   :  { %v124_v30 = vor.u32 1.1754944e-38, %v123_v25  ;;  %vm122_vm5 = vcmp.eq.f32.partialorder %v121_v27, 8.507059e+37 }
 0x18f   :  { %v193_v21 = vpop.eup %192 }
 0x190   :  { %v113_v22 = vmul.f32 %v193_v21, %v108_v20  ;;  %v111_v23 = vpop.xlane.xlu1 %110  ;;  %vm118_vm2 = vweird.f32 %v193_v21 }
 0x191   :  { %194 = vrcp.f32 %v111_v23  ;;  %vm119_vm4 = vmor %vm117_vm3, %vm118_vm2  ;;  %v138_v36 = vand.u32 2147483648, %v111_v23  ;;  %v136_v38 = vand.u32 2147483647, %v111_v23  ;;  %vm132_vm7 = vweird.f32 %v111_v23 }
 0x192   :  { %v114_v24 = vsub.f32 1.0, %v113_v22 }
 0x193   :  { %v139_v40 = vor.u32 1.1754944e-38, %v138_v36  ;;  %vm137_vm9 = vcmp.eq.f32.partialorder %v136_v38, 8.507059e+37 }
 0x194   :  { %v115_v26 = vmul.f32 %v193_v21, %v114_v24 }
 0x196   :  { %v116_v28 = vadd.f32 %v193_v21, %v115_v26 }
 0x197   :  { %v195_v29 = vpop.eup %194 }
 0x198   :  { %v120_v31 = vsel %vm119_vm4, %v193_v21, %v116_v28  ;;  %v128_v32 = vmul.f32 %v195_v29, %v111_v23  ;;  %vm133_vm6 = vweird.f32 %v195_v29 }
 0x199   :  { %v125_v33 = vsel %vm122_vm5, %v124_v30, %v120_v31  ;;  %vm134_vm8 = vmor %vm132_vm7, %vm133_vm6 }
 0x19a   :  { %v126_v34 = vmul.f32 %v189_v15, %v125_v33  ;;  %v129_v35 = vsub.f32 1.0, %v128_v32 }
 0x19c   :  { %142 = vst.msk [vmem:[#allocation7] sm:$0xff] %vm93_vm1, %v126_v34  ;;  %v130_v37 = vmul.f32 %v195_v29, %v129_v35 }
 0x19e   :  { %v131_v39 = vadd.f32 %v195_v29, %v130_v37 }
 0x1a0   :  { %v135_v41 = vsel %vm134_vm8, %v195_v29, %v131_v39 }
 0x1a1   :  { %v140_v42 = vsel %vm137_vm9, %v139_v40, %v135_v41 }
 0x1a2   :  { %v141_v43 = vmul.f32 %v191_v18, %v140_v42 }
 0x1a4   :  { %143 = vst.msk [vmem:[#allocation7 + $0x8] sm:$0xff] %vm93_vm1, %v141_v43 }
 0x1a5   :  { %156 = dma.vmem_to_hbm [thread:$0]  %s149_s24, 256, %s151_s27, [#allocation4], %s279_s28, %s279_s28, %s280_s29  }
 0x1a6   :  { %272 = dma.done.wait [#allocation4], 256  }
 0x1a7   :  { %273 = vsyncadd [#allocation4], 4294967040 }
 0x1a8   :  { %161 = vsyncpa [#allocation3], 1 }
 0x1a9   :  { %162 = vsyncpa [#allocation6], 1 }
 0x1aa   :  { %163 = vsyncpa [#allocation4], 1 }

</bundles_post_ra>
